<compile_context>
chip_gen: v7x
topology: tpu7x:2x2x1
jax: 0.10.0
libtpu: 0.0.40
codegen_flags: <defaults>
</compile_context>

<pallas_src>
import numpy as np
import jax
import jax.numpy as jnp
from jax.experimental import pallas as pl
from jax.experimental.pallas import tpu as pltpu


# ----------------------------- small helpers / glue -----------------------------

def _round_up(x, m):
    return (x + m - 1) // m * m


def build_tt_cores(key, row_dim_sizes, col_dim_sizes, ranks):
    """Deterministic stand-in for torch.rand cores.
    core_k shape = (row_dim_sizes[k], col_dim_sizes[k], r_k, r_{k+1}), ranks = [1]+ranks+[1]."""
    n_dim = len(row_dim_sizes)
    assert len(col_dim_sizes) == n_dim and len(ranks) == n_dim - 1
    full_ranks = [1] + list(ranks) + [1]
    keys = jax.random.split(key, n_dim)
    cores = []
    for k in range(n_dim):
        shape = (row_dim_sizes[k], col_dim_sizes[k], full_ranks[k], full_ranks[k + 1])
        cores.append(jax.random.uniform(keys[k], shape, dtype=jnp.float32))
    return cores


def tt_cores_to_dense_T(cores, row_dim_sizes, col_dim_sizes):
    """Contract TT cores directly into W.T with shape (N, M) = (prod(col), prod(row)).

    Row index of the result is the column multi-index (j_1 slowest), column index is
    the row multi-index (i_1 slowest) -- i.e. exactly W.T for the torch module's W,
    so no explicit transpose (extra HBM read+write) is ever materialized.
    """
    # TODO(synk): the chained tiny-rank TT core contractions (ranks 1-3, mode sizes 2-4)
    # have no clean Mosaic dot_general lowering; they are pre-contracted once at layer
    # init in plain-JAX glue.  For genuinely large TT layers a staged per-K-slice
    # contraction would avoid densifying W at all.
    n_dim = len(cores)
    T = jnp.transpose(cores[0][:, :, 0, :], (1, 0, 2))   # (n1, m1, r1)
    n_acc, m_acc = col_dim_sizes[0], row_dim_sizes[0]
    for k in range(1, n_dim):
        c = cores[k]                                     # (m, n, r, s)
        m, n, _, s = c.shape
        # cols accumulate j_1..j_k (j_1 slowest), rows accumulate i_1..i_k (i_1 slowest)
        T = jnp.einsum("BAr,mnrs->BnAms", T, c)
        n_acc *= n
        m_acc *= m
        T = T.reshape(n_acc, m_acc, s)
    return T[:, :, 0]                                    # (N, M) == W.T


def _vmem_capacity_bytes():
    try:
        return int(pltpu.get_tpu_info().vmem_capacity_bytes)
    except Exception:
        return 64 * 1024 * 1024   # conservative fallback (v7x per-TensorCore)


# --------------------------------- Pallas kernels ----------------------------------

def _tt_matmul_kernel_f32out(x_ref, wt_ref, y_ref):
    # f32 output: the output block index_map ignores k, so the block stays resident in
    # VMEM across the reduction axis -- accumulate straight into it (no scratch, no copy).
    prod = jnp.dot(x_ref[...], wt_ref[...], preferred_element_type=jnp.float32)

    @pl.when(pl.program_id(2) == 0)
    def _():
        y_ref[...] = prod

    @pl.when(pl.program_id(2) != 0)
    def _():
        y_ref[...] += prod


def _tt_matmul_kernel_scratch(x_ref, wt_ref, y_ref, acc_ref):
    # Low-precision output: accumulate in an f32 scratch, cast on the last k step.
    @pl.when(pl.program_id(2) == 0)
    def _():
        acc_ref[...] = jnp.zeros_like(acc_ref)

    acc_ref[...] += jnp.dot(x_ref[...], wt_ref[...], preferred_element_type=jnp.float32)

    @pl.when(pl.program_id(2) == pl.num_programs(2) - 1)
    def _():
        y_ref[...] = acc_ref[...].astype(y_ref.dtype)


# ------------------------------- layer construction --------------------------------

def make_tt_layer(cores, row_dim_sizes, col_dim_sizes, *,
                  use_bf16=True, out_dtype=jnp.float32,
                  batch_tile=512, m_tile=1024, k_tile=1024):
    """Prepare the TT layer once; returns (jitted_forward, wt_op).

    All O(M*N) weight work (densify, pad, cast) happens here, not per forward call.
    """
    M = int(np.prod(row_dim_sizes))
    N = int(np.prod(col_dim_sizes))

    compute_dtype = jnp.bfloat16 if use_bf16 else jnp.float32
    c_isz = jnp.dtype(compute_dtype).itemsize
    o_isz = jnp.dtype(out_dtype).itemsize
    use_scratch = jnp.dtype(out_dtype) != jnp.dtype(jnp.float32)
    # bf16 packs 16 rows per sublane group -> 16-aligned batch tile avoids relayout.
    sub = 16 if c_isz == 2 else 8

    # ---- per-generation VMEM-aware tile budget (v7x 64 MiB is the binding case) ----
    vmem_cap = _vmem_capacity_bytes()
    budget = int(vmem_cap * 0.7)

    tm = min(m_tile, _round_up(M, 128))
    tk = min(k_tile, _round_up(N, 128))
    tb_cap = max(sub, _round_up(min(batch_tile, max(batch_tile, sub)), sub))

    def footprint(tb_, tm_, tk_):
        b = 2 * tb_ * tk_ * c_isz          # double-buffered x tiles
        b += 2 * tk_ * tm_ * c_isz         # double-buffered W.T tiles
        b += 2 * tb_ * tm_ * o_isz         # double-buffered output tiles
        if use_scratch:
            b += tb_ * tm_ * 4             # f32 accumulator scratch
        return b

    while footprint(tb_cap, tm, tk) > budget and tk > 128:
        tk = max(128, tk // 2)
    while footprint(tb_cap, tm, tk) > budget and tm > 128:
        tm = max(128, tm // 2)
    while footprint(tb_cap, tm, tk) > budget and tb_cap > sub:
        tb_cap = max(sub, tb_cap // 2)

    M_pad = _round_up(M, tm)
    N_pad = _round_up(N, tk)

    # Headroom above the measured tile footprint; also lifts v5e's 16 MiB scoped default.
    vmem_limit = int(min(max(2 * footprint(tb_cap, tm, tk), 32 * 2**20),
                         vmem_cap, 128 * 2**20))

    # ---- one-time weight prep: W.T built in (N, M) layout, padded, cast to bf16 ----
    wt = tt_cores_to_dense_T(cores, row_dim_sizes, col_dim_sizes)          # (N, M), f32
    wt_op = jnp.pad(wt, ((0, N_pad - N), (0, M_pad - M))).astype(compute_dtype)
    del wt

    kernel = _tt_matmul_kernel_scratch if use_scratch else _tt_matmul_kernel_f32out
    scratch_shapes = ([pltpu.VMEM((tb_cap, tm), jnp.float32)] if use_scratch else [])

    def _forward(x, wt_op):
        B, n_in = x.shape
        assert n_in == N, "shape mismatch: ttmatrix column size vs input feature size"

        # One batch tile for small/medium B so each weight tile is DMA'd exactly once.
        tb = min(tb_cap, _round_up(B, sub))
        B_pad = _round_up(B, tb)
        x_op = jnp.pad(x, ((0, B_pad - B), (0, N_pad - N))).astype(compute_dtype)

        grid = (B_pad // tb, M_pad // tm, N_pad // tk)
        scratch = ([pltpu.VMEM((tb, tm), jnp.float32)] if use_scratch else [])

        # bytes_accessed counts block revisits: x re-read per m-tile, W per batch-tile.
        bytes_accessed = (
            grid[1] * B_pad * N_pad * c_isz
            + grid[0] * N_pad * M_pad * c_isz
            + B_pad * M_pad * o_isz)

        y_pad = pl.pallas_call(
            kernel,
            out_shape=jax.ShapeDtypeStruct((B_pad, M_pad), out_dtype),
            grid_spec=pltpu.PrefetchScalarGridSpec(
                num_scalar_prefetch=0,
                grid=grid,
                in_specs=[
                    pl.BlockSpec((tb, tk), lambda i, j, k: (i, k)),
                    pl.BlockSpec((tk, tm), lambda i, j, k: (k, j)),
                ],
                out_specs=pl.BlockSpec((tb, tm), lambda i, j, k: (i, j)),
                scratch_shapes=scratch),
            compiler_params=pltpu.CompilerParams(
                # Reduction axis (k) must stay "arbitrary"; i/j shard across TCs.
                dimension_semantics=("parallel", "parallel", "arbitrary"),
                vmem_limit_bytes=vmem_limit),
            cost_estimate=pl.CostEstimate(
                flops=2 * B_pad * M_pad * N_pad,
                bytes_accessed=int(bytes_accessed),
                transcendentals=0),
        )(x_op, wt_op)
        return y_pad[:B, :M]

    _ = scratch_shapes  # (scratch is re-derived per batch tile inside _forward)
    return jax.jit(_forward), wt_op


# ------------------------------ pure-JAX reference ---------------------------------

def tt_layer_forward_ref(x, cores, row_dim_sizes, col_dim_sizes):
    """Faithful port of the torch forward (chain of oe.contract calls)."""
    B = x.shape[0]
    n_dim = len(row_dim_sizes)
    v = x.reshape([B] + list(col_dim_sizes) + [1])
    for d in range(n_dim, 0, -1):
        # contract col-dim d and the trailing rank with core_{d-1}(m_d, n_d, r_{d-1}, r_d)
        v = jnp.tensordot(v, cores[d - 1], axes=([d, v.ndim - 1], [1, 3]))
    v = v[..., 0]                                                # squeeze trailing rank
    v = jnp.transpose(v, [0] + list(range(n_dim, 0, -1)))        # (B, m_1, ..., m_n)
    return v.reshape(B, -1)


# --------------------------------------- main ---------------------------------------

if __name__ == "__main__":
    row_dim_sizes = [2, 2, 2]     # M = 8
    col_dim_sizes = [4, 4, 2]     # N = 32
    ranks = [3, 2]                # full ranks [1, 3, 2, 1]
    B = 16

    key = jax.random.PRNGKey(0)
    kx, kc = jax.random.split(key)
    x = jax.random.uniform(kx, (B, int(np.prod(col_dim_sizes))), dtype=jnp.float32)
    cores = build_tt_cores(kc, row_dim_sizes, col_dim_sizes, ranks)

    # Layer init: TT -> dense W.T, pad, bf16 cast -- done exactly once.
    forward, wt_op = make_tt_layer(cores, row_dim_sizes, col_dim_sizes, use_bf16=True)

    y = forward(x, wt_op)
    y = jax.block_until_ready(y)

    y_ref = tt_layer_forward_ref(x, cores, row_dim_sizes, col_dim_sizes)
    assert y.shape == (B, int(np.prod(row_dim_sizes)))
    # NOTE: bf16 operands lose ~3 significant digits; tolerance reflects that.
    if not np.allclose(np.asarray(y), np.asarray(y_ref), rtol=2e-2, atol=2e-2):
        raise AssertionError("Pallas kernel output mismatches TT reference")

    print("KERNEL_OK")
</pallas_src>

<mosaic_0001>
module attributes {stable_mosaic.version = 11 : i64} {
  func.func @_tt_matmul_kernel_f32out(%arg0: i32, %arg1: i32, %arg2: i32, %arg3: memref<16x128xbf16, #tpu.memory_space<vmem>>, %arg4: memref<128x128xbf16, #tpu.memory_space<vmem>>, %arg5: memref<16x128xf32, #tpu.memory_space<vmem>>) attributes {dimension_semantics = [#tpu.dimension_semantics<parallel>, #tpu.dimension_semantics<parallel>, #tpu.dimension_semantics<arbitrary>], iteration_bounds = array<i64: 1, 1, 1>, scalar_prefetch = 0 : i64, scratch_operands = 0 : i64, tpu.core_type = #tpu.core_type<tc>, window_params = [{transform_indices = @transform_0, window_bounds = array<i64: 16, 128>}, {transform_indices = @transform_1, window_bounds = array<i64: 128, 128>}, {transform_indices = @transform_2, window_bounds = array<i64: 16, 128>}]} {
    %c0 = arith.constant 0 : index
    %c0_0 = arith.constant 0 : index
    %0 = vector.load %arg3[%c0, %c0_0] : memref<16x128xbf16, #tpu.memory_space<vmem>>, vector<16x128xbf16>
    %c0_1 = arith.constant 0 : index
    %c0_2 = arith.constant 0 : index
    %1 = vector.load %arg4[%c0_1, %c0_2] : memref<128x128xbf16, #tpu.memory_space<vmem>>, vector<128x128xbf16>
    %cst = arith.constant dense<0.000000e+00> : vector<16x128xf32>
    %2 = tpu.matmul %0, %1, %cst {dimension_numbers = #tpu.dot_dimension_numbers<[1], [0], [0], [1], [0, 0, 1, 1], [], []>} : vector<16x128xbf16>, vector<128x128xbf16>, vector<16x128xf32> -> vector<16x128xf32>
    %c0_i32 = arith.constant 0 : i32
    %3 = arith.cmpi eq, %arg2, %c0_i32 : i32
    %4 = arith.extui %3 : i1 to i32
    %c0_i32_3 = arith.constant 0 : i32
    %5 = arith.cmpi ne, %4, %c0_i32_3 : i32
    scf.if %5 {
      %c0_6 = arith.constant 0 : index
      %c0_7 = arith.constant 0 : index
      %9 = vector.load %arg5[%c0_6, %c0_7] : memref<16x128xf32, #tpu.memory_space<vmem>>, vector<16x128xf32>
      tpu.vector_store %arg5[%c0_6, %c0_7], %2 {strides = array<i32>} : memref<16x128xf32, #tpu.memory_space<vmem>>, vector<16x128xf32>,
    } else {
    }
    %c0_i32_4 = arith.constant 0 : i32
    %6 = arith.cmpi ne, %arg2, %c0_i32_4 : i32
    %7 = arith.extui %6 : i1 to i32
    %c0_i32_5 = arith.constant 0 : i32
    %8 = arith.cmpi ne, %7, %c0_i32_5 : i32
    scf.if %8 {
      %c0_6 = arith.constant 0 : index
      %c0_7 = arith.constant 0 : index
      %9 = vector.load %arg5[%c0_6, %c0_7] : memref<16x128xf32, #tpu.memory_space<vmem>>, vector<16x128xf32>
      %10 = arith.addf %9, %2 : vector<16x128xf32>
      %c0_8 = arith.constant 0 : index
      %c0_9 = arith.constant 0 : index
      %11 = vector.load %arg5[%c0_8, %c0_9] : memref<16x128xf32, #tpu.memory_space<vmem>>, vector<16x128xf32>
      tpu.vector_store %arg5[%c0_8, %c0_9], %10 {strides = array<i32>} : memref<16x128xf32, #tpu.memory_space<vmem>>, vector<16x128xf32>,
    } else {
    }
    return
  }
  func.func @transform_0(%arg0: i32, %arg1: i32, %arg2: i32) -> (i32, i32) {
    %c0_i32 = arith.constant 0 : i32
    return %arg0, %arg2 : i32, i32
  }
  func.func @transform_1(%arg0: i32, %arg1: i32, %arg2: i32) -> (i32, i32) {
    %c0_i32 = arith.constant 0 : i32
    return %arg2, %arg1 : i32, i32
  }
  func.func @transform_2(%arg0: i32, %arg1: i32, %arg2: i32) -> (i32, i32) {
    %c0_i32 = arith.constant 0 : i32
    return %arg0, %arg1 : i32, i32
  }
}

</mosaic_0001>

<bundles_post_ra>
// kernel: _forward.1
= control target key start
LH: loop header
LB: loop body
LE: loop exit
PB: predicated region body
PF: predicated region fallthrough
CT: control target
= control target key end

     0   :  { %7 = vsyncpa [#allocation3], 0  ;;  %s236_s9 = smov [#allocation2]   ;;  %s277_s0 = inlined_call_operand.vmem [shape: bf16[16,128], index: 0, kind: input, shape index: {}]   ;;  %s278_s1 = inlined_call_operand.hbm [shape: bf16[128,128], index: 1, kind: input, shape index: {}]   ;;  %s279_s2 = inlined_call_operand.vmem [shape: f32[16,128], index: 2, kind: output, shape index: {}]  }
   0x1   :  { %s15_s10 = sshll.u32 %s236_s9, 4  ;;  %s212_s13 = scalar_lea.hbm %s278_s1, 1024  ;;  %s16_s10 = int_to_ptr.vmem [resolvable:$true] %s15_s10 }
   0x2   :  { %p213_p0 = scmp.ne.s32.totalorder %s278_s1, %s212_s13  ;;  %p216_p1 = scmp.lt.u32.totalorder %s212_s13, %s278_s1 }
   0x4   :  { %p218_p2 = pnand %p216_p1, %p213_p0 }
   0x6   :  { %221 = shalt.err (!%p218_p2)
}
   0x7   :  { %s222_s18 = scalar_lea.vmem %s16_s10, 1024  ;;  %p227_p4 = scmp.lt.s32.totalorder %s16_s10, %s16_s10 }
   0x8   :  { %p223_p3 = scmp.ne.s32.totalorder %s16_s10, %s222_s18  ;;  %p228_p5 = scmp.lt.s32.totalorder %s222_s18, %s222_s18 }
   0xa   :  { %p229_p6 = por %p228_p5, %p227_p4 }
   0xc   :  { %p230_p7 = pnand %p229_p6, %p223_p3 }
   0xe   :  { %233 = shalt.err (!%p230_p7)
}
   0xf   :  { %s237_s19 = smov 64   ;;  %s238_s20 = smov 4  }
  0x10   :  { %21 = dma.hbm_to_vmem [thread:$0]  %s278_s1, 1024, %s16_s10, [#allocation3], %s237_s19, %s237_s19, %s238_s20  }
  0x11   :  { %234 = dma.done.wait [#allocation3], 1024  }
  0x12   :  { %235 = vsyncadd [#allocation3], 4294966272  ;;  %v239_v0 = vmov 0.0   ;;  %vm240_vm0 = vmmov 0   ;;  %v203_v1 = vld [vmem:[#allocation2] sm:$0xff]   ;;  %v204_v2 = vld [vmem:[#allocation2 + $0x8] sm:$0xff]  }
  0x13   :  { %178 = vmatprep.subr.bf16.mxu0 %v239_v0  ;;  %194 = vmatprep.mubr.msk.bf16.mxu0 %vm240_vm0, %v239_v0  ;;  %v205_v3 = vld [vmem:[#allocation2 + $0x10] sm:$0xff]   ;;  %v206_v4 = vld [vmem:[#allocation2 + $0x18] sm:$0xff]   ;;  %v207_v5 = vld [vmem:[#allocation2 + $0x20] sm:$0xff]  }
  0x14   :  { %179 = vmatpush3.bf16.msra.mxu0 %v203_v1  ;;  %v208_v6 = vld [vmem:[#allocation2 + $0x28] sm:$0xff]   ;;  %v209_v7 = vld [vmem:[#allocation2 + $0x30] sm:$0xff]   ;;  %v210_v8 = vld [vmem:[#allocation2 + $0x38] sm:$0xff]  }
  0x15   :  { %180 = vmatprep.subr.bf16.mxu0 %v239_v0  ;;  %v211_v9 = vld [vmem:[%s277_s0] sm:$0xff]  }
  0x18   :  { %181 = vmatpush3.bf16.msra.mxu0 %v204_v2 }
  0x19   :  { %182 = vmatprep.subr.bf16.mxu0 %v239_v0 }
  0x1c   :  { %183 = vmatpush3.bf16.msra.mxu0 %v205_v3 }
  0x1d   :  { %184 = vmatprep.subr.bf16.mxu0 %v239_v0 }
  0x20   :  { %185 = vmatpush3.bf16.msra.mxu0 %v206_v4 }
  0x21   :  { %186 = vmatprep.subr.bf16.mxu0 %v239_v0 }
  0x24   :  { %187 = vmatpush3.bf16.msra.mxu0 %v207_v5 }
  0x25   :  { %188 = vmatprep.subr.bf16.mxu0 %v239_v0 }
  0x28   :  { %189 = vmatpush3.bf16.msra.mxu0 %v208_v6 }
  0x29   :  { %190 = vmatprep.subr.bf16.mxu0 %v239_v0 }
  0x2c   :  { %191 = vmatpush3.bf16.msra.mxu0 %v209_v7 }
  0x2d   :  { %192 = vmatprep.subr.bf16.mxu0 %v239_v0 }
  0x30   :  { %193 = vmatpush3.bf16.msra.mxu0 %v210_v8 }
  0x33   :  { %195 = vmatmul.mubr.bf16.vlgmr.msra.gmra.mrb[0].mxu0 %v211_v9 }
 0x106   :  { %v132_v10 = vpop.f32.mrb[0].mxu0 }
 0x107   :  { %143 = vst [vmem:[%s279_s2] sm:$0xff] %v132_v10  ;;  %v196_v11 = vpop.f32.mrb[1].mxu0 }
 0x108   :  { %v135_v12 = vpop.f32.mrb[2].mxu0 }
 0x109   :  { %144 = vst [vmem:[%s279_s2 + $0x8] sm:$0xff] %v135_v12  ;;  %v197_v13 = vpop.f32.mrb[3].mxu0 }
 0x10a   :  { %159 = vsyncpa [#allocation3], 1 }

</bundles_post_ra>
